<compile_context>
chip_gen: v7x
topology: tpu7x:2x2x1
jax: 0.10.0
libtpu: 0.0.40
codegen_flags: <defaults>
</compile_context>

<pallas_src>
import math

import jax
import jax.numpy as jnp
from jax import lax
from jax.experimental import pallas as pl
from jax.experimental.pallas import tpu as pltpu

NOISE_SCALE = 0.5
_NEG_HALF_INV_VAR = -0.5 / (NOISE_SCALE * NOISE_SCALE)          # compile-time
_LOG_NORM = -(math.log(NOISE_SCALE) + 0.5 * math.log(2.0 * math.pi))


def _cdiv(a: int, b: int) -> int:
    return (a + b - 1) // b


def _round_up(x: int, m: int) -> int:
    return _cdiv(x, m) * m


def optimal_critic_kernel(obs_ref, mean_ref, joint_ref, prod_ref):
    # obs_ref:  [Nr, 1]  resident column of observations
    # mean_ref: [1, Nc]  resident lane-dense row of means
    # joint_ref / prod_ref: [TM, TN] output tiles
    i = pl.program_id(0)
    j = pl.program_id(1)
    tm, tn = joint_ref.shape                                     # static tile dims

    row0 = i * tm
    col0 = j * tn

    # Per-tile slices of the resident inputs (tiny: [tm,1] and [1,tn]).
    obs = obs_ref[pl.ds(pl.multiple_of(row0, 8), tm), :]         # [tm, 1]
    mean = mean_ref[:, pl.ds(pl.multiple_of(col0, 128), tn)]     # [1, tn]

    # Does the global diagonal intersect this tile?
    on_diag = jnp.logical_and(row0 < col0 + tn, col0 < row0 + tm)

    @pl.when(on_diag)
    def _():
        # Fused compute inside the branch: no cross-branch materialization.
        diff = obs - mean                                        # [tm, tn]
        scores = diff * diff * _NEG_HALF_INV_VAR + _LOG_NORM     # [tm, tn]
        # Single iota-difference compare: global (row == col) <=>
        # (local_row - local_col) == (col0 - row0).
        d = (lax.broadcasted_iota(jnp.int32, (tm, tn), 0)
             - lax.broadcasted_iota(jnp.int32, (tm, tn), 1))
        joint = jnp.where(d == (col0 - row0), scores, 0.0)
        joint_ref[...] = joint
        prod_ref[...] = scores - joint                           # exact off-diag scores

    @pl.when(jnp.logical_not(on_diag))
    def _():
        # Off-diagonal tiles: no iota / select work at all.
        diff = obs - mean
        joint_ref[...] = jnp.zeros((tm, tn), dtype=joint_ref.dtype)
        prod_ref[...] = diff * diff * _NEG_HALF_INV_VAR + _LOG_NORM


def optimal_critic(parameters, design, obs, *, tm_max=512, tn_max=2048):
    """parameters: [N, K], design: [K, 1], obs: [N, 1] -> (joint [N,N], prod [N,N])."""
    N, _K = parameters.shape

    # Hoist the tiny GEMV out of the kernel (would be a 1-wide MXU op otherwise).
    mean = (parameters @ design).reshape(1, N).astype(jnp.float32)   # [1, N] lane-dense
    obs_col = obs.reshape(N, 1).astype(jnp.float32)                  # [N, 1]

    # Minimal hardware padding (sublane=8 rows, lane=128 cols).
    nr0 = _round_up(N, 8)
    nc0 = _round_up(N, 128)

    # Rows: tile near tm_max, minimal extra padding, >=2 row blocks when
    # possible so both v7x TensorCores get work on the "parallel" axis.
    grid_rows = _cdiv(nr0, tm_max)
    if nr0 >= 16:
        grid_rows = max(grid_rows, 2)
    TM = _round_up(_cdiv(nr0, grid_rows), 8)
    Nr = TM * grid_rows

    # Cols: lane-dense tile near tn_max, minimal extra padding.
    grid_cols = _cdiv(nc0, tn_max)
    TN = _round_up(_cdiv(nc0, grid_cols), 128)
    Nc = TN * grid_cols

    obs_p = jnp.pad(obs_col, ((0, Nr - N), (0, 0)))
    mean_p = jnp.pad(mean, ((0, 0), (0, Nc - N)))

    grid = (grid_rows, grid_cols)

    joint_p, prod_p = pl.pallas_call(
        optimal_critic_kernel,
        out_shape=(
            jax.ShapeDtypeStruct((Nr, Nc), jnp.float32),
            jax.ShapeDtypeStruct((Nr, Nc), jnp.float32),
        ),
        grid=grid,
        in_specs=[
            pl.BlockSpec((Nr, 1), lambda i, j: (0, 0)),    # obs resident (DMA once)
            pl.BlockSpec((1, Nc), lambda i, j: (0, 0)),    # mean resident (DMA once)
        ],
        out_specs=(
            pl.BlockSpec((TM, TN), lambda i, j: (i, j)),
            pl.BlockSpec((TM, TN), lambda i, j: (i, j)),
        ),
        compiler_params=pltpu.CompilerParams(
            dimension_semantics=("parallel", "parallel"),
            # 2 outputs x 2 buffers x 512x2048x4B = 16 MiB; explicit limit so
            # v5e's 16 MiB default scoped VMEM does not reject the tiling.
            vmem_limit_bytes=32 * 1024 * 1024,
        ),
    )(obs_p, mean_p)

    if Nr == N and Nc == N:
        return joint_p, prod_p
    return joint_p[:N, :N], prod_p[:N, :N]


def _reference(parameters, design, obs):
    """Plain-JAX mirror of the PyTorch forward (for verification)."""
    mean = parameters @ design                                   # [N, 1]
    sigma = NOISE_SCALE
    lp = (-0.5 * ((obs[None, :, :] - mean[:, None, :]) / sigma) ** 2
          - jnp.log(sigma) - 0.5 * jnp.log(2.0 * jnp.pi))        # [N, N, 1]
    all_scores = jnp.squeeze(lp, -1).T                           # [N, N]
    pos_mask = jnp.eye(all_scores.shape[0], dtype=all_scores.dtype)
    neg_mask = 1.0 - pos_mask
    return all_scores * pos_mask, all_scores * neg_mask


def _check(N, K, seed):
    key = jax.random.PRNGKey(seed)
    k_p, k_d, k_o = jax.random.split(key, 3)
    parameters = jax.random.normal(k_p, (N, K), dtype=jnp.float32)
    design = jax.random.normal(k_d, (K, 1), dtype=jnp.float32)
    obs = jax.random.normal(k_o, (N, 1), dtype=jnp.float32)

    joint, prod = optimal_critic(parameters, design, obs)
    joint = jax.block_until_ready(joint)
    prod = jax.block_until_ready(prod)

    joint_ref, prod_ref = _reference(parameters, design, obs)
    assert jnp.allclose(joint, joint_ref, atol=1e-4, rtol=1e-4), f"joint mismatch N={N}"
    assert jnp.allclose(prod, prod_ref, atol=1e-4, rtol=1e-4), f"prod mismatch N={N}"


if __name__ == "__main__":
    # Small shape matching the test (single small lane-dense tile path).
    _check(N=8, K=32, seed=0)
    # Larger shape exercising the multi-tile grid (diagonal + off-diagonal tiles,
    # >=2 row blocks, minimal-padding tiling).
    _check(N=600, K=32, seed=0)
    print("KERNEL_OK")
</pallas_src>

<mosaic_0001>
module attributes {stable_mosaic.version = 11 : i64} {
  func.func @optimal_critic_kernel(%arg0: i32, %arg1: i32, %arg2: memref<8x1xf32, #tpu.memory_space<vmem>>, %arg3: memref<1x128xf32, #tpu.memory_space<vmem>>, %arg4: memref<8x128xf32, #tpu.memory_space<vmem>>, %arg5: memref<8x128xf32, #tpu.memory_space<vmem>>) attributes {dimension_semantics = [#tpu.dimension_semantics<parallel>, #tpu.dimension_semantics<parallel>], iteration_bounds = array<i64: 1, 1>, scalar_prefetch = 0 : i64, scratch_operands = 0 : i64, tpu.core_type = #tpu.core_type<tc>, window_params = [{pipeline_mode = #tpu.pipeline_mode<synchronous>, transform_indices = @transform_0, window_bounds = array<i64: 8, 1>}, {pipeline_mode = #tpu.pipeline_mode<synchronous>, transform_indices = @transform_1, window_bounds = array<i64: 1, 128>}, {transform_indices = @transform_2, window_bounds = array<i64: 8, 128>}, {transform_indices = @transform_3, window_bounds = array<i64: 8, 128>}]} {
    %c8_i32 = arith.constant 8 : i32
    %0 = arith.muli %arg0, %c8_i32 : i32
    %c128_i32 = arith.constant 128 : i32
    %1 = arith.muli %arg1, %c128_i32 : i32
    %2 = tpu.assume_multiple %0, 8 : i32
    %3 = arith.index_cast %2 : i32 to index
    %c0 = arith.constant 0 : index
    %4 = vector.load %arg2[%3, %c0] : memref<8x1xf32, #tpu.memory_space<vmem>>, vector<8x1xf32>
    %5 = tpu.assume_multiple %1, 128 : i32
    %c0_0 = arith.constant 0 : index
    %6 = arith.index_cast %5 : i32 to index
    %7 = vector.load %arg3[%c0_0, %6] : memref<1x128xf32, #tpu.memory_space<vmem>>, vector<1x128xf32>
    %c128_i32_1 = arith.constant 128 : i32
    %8 = arith.addi %1, %c128_i32_1 : i32
    %9 = arith.cmpi slt, %0, %8 : i32
    %c8_i32_2 = arith.constant 8 : i32
    %10 = arith.addi %0, %c8_i32_2 : i32
    %11 = arith.cmpi slt, %1, %10 : i32
    %12 = arith.andi %9, %11 : i1
    %13 = arith.extui %12 : i1 to i32
    %c0_i32 = arith.constant 0 : i32
    %14 = arith.cmpi ne, %13, %c0_i32 : i32
    scf.if %14 {
      %18 = vector.broadcast %4 : vector<8x1xf32> to vector<8x128xf32>
      %19 = vector.broadcast %7 : vector<1x128xf32> to vector<8x128xf32>
      %20 = arith.subf %18, %19 : vector<8x128xf32>
      %21 = arith.mulf %20, %20 : vector<8x128xf32>
      %cst = arith.constant -2.000000e+00 : f32
      %22 = vector.broadcast %cst : f32 to vector<8x128xf32>
      %23 = arith.mulf %21, %22 : vector<8x128xf32>
      %cst_4 = arith.constant -0.22579135 : f32
      %24 = vector.broadcast %cst_4 : f32 to vector<8x128xf32>
      %25 = arith.addf %23, %24 : vector<8x128xf32>
      %26 = tpu.iota {dimensions = array<i32: 0>} : vector<8x128xi32>
      %27 = tpu.iota {dimensions = array<i32: 1>} : vector<8x128xi32>
      %28 = arith.subi %26, %27 : vector<8x128xi32>
      %29 = arith.subi %1, %0 : i32
      %30 = vector.broadcast %29 : i32 to vector<8x128xi32>
      %31 = arith.cmpi eq, %28, %30 : vector<8x128xi32>
      %cst_5 = arith.constant 0.000000e+00 : f32
      %32 = vector.broadcast %cst_5 : f32 to vector<8x128xf32>
      %33 = arith.select %31, %25, %32 : vector<8x128xi1>, vector<8x128xf32>
      %c0_6 = arith.constant 0 : index
      %c0_7 = arith.constant 0 : index
      %34 = vector.load %arg4[%c0_6, %c0_7] : memref<8x128xf32, #tpu.memory_space<vmem>>, vector<8x128xf32>
      tpu.vector_store %arg4[%c0_6, %c0_7], %33 {strides = array<i32>} : memref<8x128xf32, #tpu.memory_space<vmem>>, vector<8x128xf32>,
      %35 = arith.subf %25, %33 : vector<8x128xf32>
      %c0_8 = arith.constant 0 : index
      %c0_9 = arith.constant 0 : index
      %36 = vector.load %arg5[%c0_8, %c0_9] : memref<8x128xf32, #tpu.memory_space<vmem>>, vector<8x128xf32>
      tpu.vector_store %arg5[%c0_8, %c0_9], %35 {strides = array<i32>} : memref<8x128xf32, #tpu.memory_space<vmem>>, vector<8x128xf32>,
    } else {
    }
    %true = arith.constant true
    %15 = arith.xori %12, %true : i1
    %16 = arith.extui %15 : i1 to i32
    %c0_i32_3 = arith.constant 0 : i32
    %17 = arith.cmpi ne, %16, %c0_i32_3 : i32
    scf.if %17 {
      %18 = vector.broadcast %4 : vector<8x1xf32> to vector<8x128xf32>
      %19 = vector.broadcast %7 : vector<1x128xf32> to vector<8x128xf32>
      %20 = arith.subf %18, %19 : vector<8x128xf32>
      %cst = arith.constant 0.000000e+00 : f32
      %21 = vector.broadcast %cst : f32 to vector<8x128xf32>
      %c0_4 = arith.constant 0 : index
      %c0_5 = arith.constant 0 : index
      %22 = vector.load %arg4[%c0_4, %c0_5] : memref<8x128xf32, #tpu.memory_space<vmem>>, vector<8x128xf32>
      tpu.vector_store %arg4[%c0_4, %c0_5], %21 {strides = array<i32>} : memref<8x128xf32, #tpu.memory_space<vmem>>, vector<8x128xf32>,
      %23 = arith.mulf %20, %20 : vector<8x128xf32>
      %cst_6 = arith.constant -2.000000e+00 : f32
      %24 = vector.broadcast %cst_6 : f32 to vector<8x128xf32>
      %25 = arith.mulf %23, %24 : vector<8x128xf32>
      %cst_7 = arith.constant -0.22579135 : f32
      %26 = vector.broadcast %cst_7 : f32 to vector<8x128xf32>
      %27 = arith.addf %25, %26 : vector<8x128xf32>
      %c0_8 = arith.constant 0 : index
      %c0_9 = arith.constant 0 : index
      %28 = vector.load %arg5[%c0_8, %c0_9] : memref<8x128xf32, #tpu.memory_space<vmem>>, vector<8x128xf32>
      tpu.vector_store %arg5[%c0_8, %c0_9], %27 {strides = array<i32>} : memref<8x128xf32, #tpu.memory_space<vmem>>, vector<8x128xf32>,
    } else {
    }
    return
  }
  func.func @transform_0(%arg0: i32, %arg1: i32) -> (i32, i32) {
    %c0_i32 = arith.constant 0 : i32
    %c0_i32_0 = arith.constant 0 : i32
    %c0_i32_1 = arith.constant 0 : i32
    return %c0_i32, %c0_i32_0 : i32, i32
  }
  func.func @transform_1(%arg0: i32, %arg1: i32) -> (i32, i32) {
    %c0_i32 = arith.constant 0 : i32
    %c0_i32_0 = arith.constant 0 : i32
    %c0_i32_1 = arith.constant 0 : i32
    return %c0_i32, %c0_i32_0 : i32, i32
  }
  func.func @transform_2(%arg0: i32, %arg1: i32) -> (i32, i32) {
    %c0_i32 = arith.constant 0 : i32
    return %arg0, %arg1 : i32, i32
  }
  func.func @transform_3(%arg0: i32, %arg1: i32) -> (i32, i32) {
    %c0_i32 = arith.constant 0 : i32
    return %arg0, %arg1 : i32, i32
  }
}

</mosaic_0001>

<bundles_post_ra>
// kernel: tpu_custom_call.1
= control target key start
LH: loop header
LB: loop body
LE: loop exit
PB: predicated region body
PF: predicated region fallthrough
CT: control target
= control target key end

     0   :  { %9 = vsyncpa [#allocation3], 0  ;;  %s213_s0 = inlined_call_operand.vmem [shape: f32[8,1], index: 0, kind: input, shape index: {}]   ;;  %s214_s1 = inlined_call_operand.vmem [shape: f32[1,128], index: 1, kind: input, shape index: {}]   ;;  %s215_s2 = inlined_call_operand.hbm [shape: f32[8,128], index: 2, kind: output, shape index: {0}]   ;;  %s216_s3 = inlined_call_operand.hbm [shape: f32[8,128], index: 3, kind: output, shape index: {1}]  }
   0x1   :  { %v18_v0 = vld [vmem:[%s213_s0] sm:$0xff] }
   0x2   :  { %10 = vsyncpa [#allocation5], 0  ;;  %v160_v1 = vmov 0   ;;  %v46_v2 = vlaneseq  ;;  %v107_v3 = vld [vmem:[%s214_s1] ss:$0 sm:$0xff]  ;;  %s161_s16 = smov [#allocation2]  }
   0x3   :  { %111 = vset.pattern.permute.xlu0 %v160_v1  ;;  %s84_s17 = sshll.u32 %s161_s16, 4  ;;  %s162_s0 = smov [#allocation4]   ;;  %s85_s17 = int_to_ptr.vmem [resolvable:$true] %s84_s17 }
   0x4   :  { %33 = vperm.xlu0 %111, %v18_v0   ;;  %v47_v4 = vshrl.u32 %v46_v2, 7  ;;  %v49_v5 = vand.u32 127, %v46_v2  ;;  %s94_s18 = sshll.u32 %s162_s0, 4  ;;  %s112_s19 = scalar_lea.vmem %s85_s17, 128  ;;  %s95_s18 = int_to_ptr.vmem [resolvable:$true] %s94_s18 }
   0x5   :  { %p113_p0 = scmp.ne.s32.totalorder %s85_s17, %s112_s19  ;;  %p117_p1 = scmp.lt.s32.totalorder %s85_s17, %s85_s17 }
   0x6   :  { %v50_v8 = vsub.s32 %v47_v4, %v49_v5  ;;  %p118_p2 = scmp.lt.s32.totalorder %s112_s19, %s112_s19 }
   0x8   :  { %vm53_vm0 = vcmp.eq.s32.totalorder %v50_v8, 0  ;;  %p119_p3 = por %p118_p2, %p117_p1 }
   0xa   :  { %p120_p4 = pnand %p119_p3, %p113_p0 }
  0x83   :  { %v34_v6 = vpop.permute.xlu0 %33 }
  0x84   :  { %v42_v7 = vsub.f32 %v34_v6, %v107_v3 }
  0x86   :  { %v43_v9 = vmul.f32 %v42_v7, %v42_v7 }
  0x88   :  { %v44_v10 = vmul.f32 -2.0, %v43_v9 }
  0x8a   :  { %v45_v11 = vadd.f32 -0.22579135, %v44_v10 }
  0x8c   :  { %v54_v12 = vsel %vm53_vm0, %v45_v11, 0.0 }
  0x8d   :  { %55 = vst [vmem:[#allocation2] sm:$0xff] %v54_v12  ;;  %v56_v13 = vsub.f32 %v45_v11, %v54_v12 }
  0x8e   :  { %123 = shalt.err (!%p120_p4)
}
  0x8f   :  { %s124_s21 = scalar_lea.hbm %s215_s2, 128 }
  0x90   :  { %p125_p5 = scmp.ne.s32.totalorder %s215_s2, %s124_s21  ;;  %p128_p6 = scmp.lt.u32.totalorder %s124_s21, %s215_s2 }
  0x92   :  { %p130_p7 = pnand %p128_p6, %p125_p5 }
  0x94   :  { %133 = shalt.err (!%p130_p7)
}
  0x95   :  { %87 = dma.vmem_to_hbm [thread:$0]  %s85_s17, 128, %s215_s2, [#allocation3]   ;;  %57 = vst [vmem:[#allocation4] sm:$0xff] %v56_v13 }
  0x96   :  { %s134_s28 = scalar_lea.vmem %s95_s18, 128  ;;  %p139_p9 = scmp.lt.s32.totalorder %s95_s18, %s95_s18 }
  0x97   :  { %p135_p8 = scmp.ne.s32.totalorder %s95_s18, %s134_s28  ;;  %p140_p10 = scmp.lt.s32.totalorder %s134_s28, %s134_s28 }
  0x99   :  { %p141_p11 = por %p140_p10, %p139_p9 }
  0x9b   :  { %p142_p12 = pnand %p141_p11, %p135_p8 }
  0x9d   :  { %145 = shalt.err (!%p142_p12)
}
  0x9e   :  { %s146_s4 = scalar_lea.hbm %s216_s3, 128 }
  0x9f   :  { %p147_p13 = scmp.ne.s32.totalorder %s216_s3, %s146_s4  ;;  %p150_p0 = scmp.lt.u32.totalorder %s146_s4, %s216_s3 }
  0xa1   :  { %p152_p1 = pnand %p150_p0, %p147_p13 }
  0xa3   :  { %155 = shalt.err (!%p152_p1)
}
  0xa4   :  { %97 = dma.vmem_to_hbm [thread:$0]  %s95_s18, 128, %s216_s3, [#allocation5]  }
  0xa5   :  { %156 = dma.done.wait [#allocation3], 128  }
  0xa6   :  { %157 = vsyncadd [#allocation3], 4294967168 }
  0xa7   :  { %158 = dma.done.wait [#allocation5], 128  }
  0xa8   :  { %159 = vsyncadd [#allocation5], 4294967168 }
  0xa9   :  { %104 = vsyncpa [#allocation3], 1 }
  0xaa   :  { %105 = vsyncpa [#allocation5], 1 }

</bundles_post_ra>
